<compile_context>
chip_gen: v6e
topology: v6e:2x2x1
jax: 0.10.0
libtpu: 0.0.40
codegen_flags: <defaults>
</compile_context>

<pallas_src>
import functools

import jax
import jax.numpy as jnp
import numpy as np
from jax import lax
from jax.experimental import pallas as pl
from jax.experimental.pallas import tpu as pltpu


def _make_kernel(kk, tr, wo, cs, cout):
    """Fused conv(3x3,s)+BN+ReLU6 over one row-block of one image."""

    def kernel(x_ref, w_ref, b_ref, o_ref):
        # x_ref: (hs_pad, ws, cs)   space-to-depth padded image (VMEM resident)
        # w_ref: (kk*kk, cs, cout)  BN-scale-folded weights, one (cs,cout)/tap
        # b_ref: (1, cout)          BN bias
        # o_ref: (tr, wo, cout)     output row-block (NHWC)
        r = pl.program_id(1)
        row0 = r * tr
        acc = jnp.zeros((tr * wo, cout), dtype=jnp.float32)
        for kr in range(kk):
            for kc in range(kk):
                tap = x_ref[pl.ds(row0 + kr, tr), pl.ds(kc, wo), :]
                tap = tap.reshape(tr * wo, cs)
                acc = acc + jnp.dot(tap, w_ref[kr * kk + kc],
                                    preferred_element_type=jnp.float32)
        y = jnp.clip(acc + b_ref[...], 0.0, 6.0)
        o_ref[...] = y.reshape(tr, wo, cout).astype(o_ref.dtype)

    return kernel


@functools.partial(jax.jit, static_argnames=("stride", "compute_dtype"))
def conv2d_3x3_forward(x, weight, gamma, beta, running_mean, running_var,
                       stride=2, eps=1e-5, compute_dtype=jnp.float32):
    """x: (N, Cin, H, W) NCHW; weight: (Cout, Cin, 3, 3). Returns NCHW f32."""
    n, cin, h, w = x.shape
    cout = weight.shape[0]
    assert stride in (1, 2), "MobileNetV2 conv2d_3x3 uses stride 1 or 2"
    s = stride
    kk = -(-3 // s)                 # spatial taps per axis after space-to-depth
    cs = cin * s * s                # channels after space-to-depth

    ho = (h + 2 - 3) // s + 1
    wo = (w + 2 - 3) // s + 1

    # Row-block size: aim for ~1024 im2col rows (tr*wo) per grid step.
    tr = max(1, min(ho, 1024 // max(wo, 1)))
    ho_pad = pl.cdiv(ho, tr) * tr

    # ---- host-side layout prep (single fused pad + transpose pass) ----
    # NCHW -> NHWC, conv padding (+ extra rows so every row-block stays in
    # bounds), then space-to-depth by `s`. Extra padded rows/cols only ever
    # multiply zero tap-weights, so numerics are unchanged.
    hp = (ho_pad + kk - 1) * s
    wp = (wo + kk - 1) * s
    x_nhwc = jnp.transpose(x, (0, 2, 3, 1))
    xp = jnp.pad(x_nhwc, ((0, 0), (1, hp - 1 - h), (1, wp - 1 - w), (0, 0)))
    xs = xp.reshape(n, hp // s, s, wp // s, s, cin)
    xs = jnp.transpose(xs, (0, 1, 3, 5, 2, 4)).reshape(n, hp // s, wp // s, cs)
    xs = xs.astype(compute_dtype)
    hs_pad, ws = hp // s, wp // s

    # ---- weights: remap 3x3 taps to space-to-depth taps, fold BN scale ----
    scale = gamma / jnp.sqrt(running_var + eps)                 # (cout,)
    bias = (beta - running_mean * scale).reshape(1, cout).astype(jnp.float32)
    w2 = jnp.pad(weight, ((0, 0), (0, 0), (0, kk * s - 3), (0, kk * s - 3)))
    w2 = w2.reshape(cout, cin, kk, s, kk, s)
    w2 = jnp.transpose(w2, (2, 4, 1, 3, 5, 0)).reshape(kk * kk, cs, cout)
    w_mat = (w2 * scale[None, None, :]).astype(compute_dtype)

    kernel = _make_kernel(kk, tr, wo, cs, cout)

    out = pl.pallas_call(
        kernel,
        out_shape=jax.ShapeDtypeStruct((n, ho_pad, wo, cout), jnp.float32),
        grid_spec=pltpu.PrefetchScalarGridSpec(
            num_scalar_prefetch=0,
            grid=(n, ho_pad // tr),
            in_specs=[
                # Full (padded, s2d) image: index depends only on the batch
                # axis, so it is DMA'd once per image and stays VMEM-resident
                # while all of its row-blocks are computed.
                pl.BlockSpec((None, hs_pad, ws, cs), lambda b, r: (b, 0, 0, 0)),
                pl.BlockSpec((kk * kk, cs, cout), lambda b, r: (0, 0, 0)),
                pl.BlockSpec((1, cout), lambda b, r: (0, 0)),
            ],
            out_specs=pl.BlockSpec((None, tr, wo, cout),
                                   lambda b, r: (b, r, 0, 0)),
        ),
        compiler_params=pltpu.CompilerParams(
            dimension_semantics=("parallel", "parallel"),
            vmem_limit_bytes=32 * 1024 * 1024),
    )(xs, w_mat, bias)

    out = out[:, :ho]                          # drop row padding
    return jnp.transpose(out, (0, 3, 1, 2))    # NHWC -> NCHW (module contract)


def _reference(x, weight, gamma, beta, running_mean, running_var, stride, eps=1e-5):
    out = lax.conv_general_dilated(
        x, weight, window_strides=(stride, stride),
        padding=((1, 1), (1, 1)),
        dimension_numbers=("NCHW", "OIHW", "NCHW"))
    out = (out - running_mean[None, :, None, None]) / jnp.sqrt(
        running_var[None, :, None, None] + eps)
    out = out * gamma[None, :, None, None] + beta[None, :, None, None]
    return jnp.clip(out, 0.0, 6.0)


if __name__ == "__main__":
    key = jax.random.PRNGKey(0)
    k_x, k_w, k_g, k_b, k_m, k_v = jax.random.split(key, 6)

    N, C_IN, H, W = 2, 4, 16, 16
    C_OUT = 8

    x = jax.random.normal(k_x, (N, C_IN, H, W), dtype=jnp.float32)
    weight = 0.1 * jax.random.normal(k_w, (C_OUT, C_IN, 3, 3), dtype=jnp.float32)
    gamma = 0.5 + jax.random.uniform(k_g, (C_OUT,), dtype=jnp.float32)
    beta = 0.1 * jax.random.normal(k_b, (C_OUT,), dtype=jnp.float32)
    running_mean = 0.1 * jax.random.normal(k_m, (C_OUT,), dtype=jnp.float32)
    running_var = 0.5 + jax.random.uniform(k_v, (C_OUT,), dtype=jnp.float32)

    for stride in (2, 1):
        out = conv2d_3x3_forward(x, weight, gamma, beta, running_mean,
                                 running_var, stride=stride)
        out = jax.block_until_ready(out)
        ref = _reference(x, weight, gamma, beta, running_mean, running_var,
                         stride)
        np.testing.assert_allclose(np.asarray(out), np.asarray(ref),
                                   atol=2e-4, rtol=2e-4)
        ho = (H + 2 - 3) // stride + 1
        wo = (W + 2 - 3) // stride + 1
        assert out.shape == (N, C_OUT, ho, wo)

    print("KERNEL_OK")
</pallas_src>

<mosaic_0001>
module attributes {stable_mosaic.version = 11 : i64} {
  func.func @kernel(%arg0: i32, %arg1: i32, %arg2: memref<1x9x9x16xf32, #tpu.memory_space<vmem>>, %arg3: memref<4x16x8xf32, #tpu.memory_space<vmem>>, %arg4: memref<1x8xf32, #tpu.memory_space<vmem>>, %arg5: memref<1x8x8x8xf32, #tpu.memory_space<vmem>>) attributes {dimension_semantics = [#tpu.dimension_semantics<parallel>, #tpu.dimension_semantics<parallel>], iteration_bounds = array<i64: 2, 1>, scalar_prefetch = 0 : i64, scratch_operands = 0 : i64, tpu.core_type = #tpu.core_type<tc>, window_params = [{transform_indices = @transform_0, window_bounds = array<i64: 1, 9, 9, 16>}, {pipeline_mode = #tpu.pipeline_mode<synchronous>, transform_indices = @transform_1, window_bounds = array<i64: 4, 16, 8>}, {pipeline_mode = #tpu.pipeline_mode<synchronous>, transform_indices = @transform_2, window_bounds = array<i64: 1, 8>}, {transform_indices = @transform_3, window_bounds = array<i64: 1, 8, 8, 8>}]} {
    %c8_i32 = arith.constant 8 : i32
    %0 = arith.muli %arg1, %c8_i32 : i32
    %cst = arith.constant 0.000000e+00 : f32
    %1 = vector.broadcast %cst : f32 to vector<64x8xf32>
    %c0_i32 = arith.constant 0 : i32
    %2 = arith.addi %0, %c0_i32 : i32
    %c0 = arith.constant 0 : index
    %3 = arith.index_cast %2 : i32 to index
    %c0_0 = arith.constant 0 : index
    %c0_1 = arith.constant 0 : index
    %4 = vector.load %arg2[%c0, %3, %c0_0, %c0_1] : memref<1x9x9x16xf32, #tpu.memory_space<vmem>>, vector<1x8x8x16xf32>
    %5 = vector.shape_cast %4 : vector<1x8x8x16xf32> to vector<8x8x16xf32>
    %6 = vector.shape_cast %5 : vector<8x8x16xf32> to vector<64x16xf32>
    %c0_2 = arith.constant 0 : index
    %c0_3 = arith.constant 0 : index
    %c0_4 = arith.constant 0 : index
    %7 = vector.load %arg3[%c0_2, %c0_3, %c0_4] : memref<4x16x8xf32, #tpu.memory_space<vmem>>, vector<1x16x8xf32>
    %8 = vector.shape_cast %7 : vector<1x16x8xf32> to vector<16x8xf32>
    %cst_5 = arith.constant dense<0.000000e+00> : vector<64x8xf32>
    %9 = tpu.matmul %6, %8, %cst_5 {dimension_numbers = #tpu.dot_dimension_numbers<[1], [0], [0], [1], [0, 0, 1, 1], [], []>} : vector<64x16xf32>, vector<16x8xf32>, vector<64x8xf32> -> vector<64x8xf32>
    %10 = arith.addf %1, %9 : vector<64x8xf32>
    %c0_i32_6 = arith.constant 0 : i32
    %11 = arith.addi %0, %c0_i32_6 : i32
    %c0_7 = arith.constant 0 : index
    %12 = arith.index_cast %11 : i32 to index
    %c1 = arith.constant 1 : index
    %c0_8 = arith.constant 0 : index
    %13 = vector.load %arg2[%c0_7, %12, %c1, %c0_8] : memref<1x9x9x16xf32, #tpu.memory_space<vmem>>, vector<1x8x8x16xf32>
    %14 = vector.shape_cast %13 : vector<1x8x8x16xf32> to vector<8x8x16xf32>
    %15 = vector.shape_cast %14 : vector<8x8x16xf32> to vector<64x16xf32>
    %c1_9 = arith.constant 1 : index
    %c0_10 = arith.constant 0 : index
    %c0_11 = arith.constant 0 : index
    %16 = vector.load %arg3[%c1_9, %c0_10, %c0_11] : memref<4x16x8xf32, #tpu.memory_space<vmem>>, vector<1x16x8xf32>
    %17 = vector.shape_cast %16 : vector<1x16x8xf32> to vector<16x8xf32>
    %cst_12 = arith.constant dense<0.000000e+00> : vector<64x8xf32>
    %18 = tpu.matmul %15, %17, %cst_12 {dimension_numbers = #tpu.dot_dimension_numbers<[1], [0], [0], [1], [0, 0, 1, 1], [], []>} : vector<64x16xf32>, vector<16x8xf32>, vector<64x8xf32> -> vector<64x8xf32>
    %19 = arith.addf %10, %18 : vector<64x8xf32>
    %c1_i32 = arith.constant 1 : i32
    %20 = arith.addi %0, %c1_i32 : i32
    %c0_13 = arith.constant 0 : index
    %21 = arith.index_cast %20 : i32 to index
    %c0_14 = arith.constant 0 : index
    %c0_15 = arith.constant 0 : index
    %22 = vector.load %arg2[%c0_13, %21, %c0_14, %c0_15] : memref<1x9x9x16xf32, #tpu.memory_space<vmem>>, vector<1x8x8x16xf32>
    %23 = vector.shape_cast %22 : vector<1x8x8x16xf32> to vector<8x8x16xf32>
    %24 = vector.shape_cast %23 : vector<8x8x16xf32> to vector<64x16xf32>
    %c2 = arith.constant 2 : index
    %c0_16 = arith.constant 0 : index
    %c0_17 = arith.constant 0 : index
    %25 = vector.load %arg3[%c2, %c0_16, %c0_17] : memref<4x16x8xf32, #tpu.memory_space<vmem>>, vector<1x16x8xf32>
    %26 = vector.shape_cast %25 : vector<1x16x8xf32> to vector<16x8xf32>
    %cst_18 = arith.constant dense<0.000000e+00> : vector<64x8xf32>
    %27 = tpu.matmul %24, %26, %cst_18 {dimension_numbers = #tpu.dot_dimension_numbers<[1], [0], [0], [1], [0, 0, 1, 1], [], []>} : vector<64x16xf32>, vector<16x8xf32>, vector<64x8xf32> -> vector<64x8xf32>
    %28 = arith.addf %19, %27 : vector<64x8xf32>
    %c1_i32_19 = arith.constant 1 : i32
    %29 = arith.addi %0, %c1_i32_19 : i32
    %c0_20 = arith.constant 0 : index
    %30 = arith.index_cast %29 : i32 to index
    %c1_21 = arith.constant 1 : index
    %c0_22 = arith.constant 0 : index
    %31 = vector.load %arg2[%c0_20, %30, %c1_21, %c0_22] : memref<1x9x9x16xf32, #tpu.memory_space<vmem>>, vector<1x8x8x16xf32>
    %32 = vector.shape_cast %31 : vector<1x8x8x16xf32> to vector<8x8x16xf32>
    %33 = vector.shape_cast %32 : vector<8x8x16xf32> to vector<64x16xf32>
    %c3 = arith.constant 3 : index
    %c0_23 = arith.constant 0 : index
    %c0_24 = arith.constant 0 : index
    %34 = vector.load %arg3[%c3, %c0_23, %c0_24] : memref<4x16x8xf32, #tpu.memory_space<vmem>>, vector<1x16x8xf32>
    %35 = vector.shape_cast %34 : vector<1x16x8xf32> to vector<16x8xf32>
    %cst_25 = arith.constant dense<0.000000e+00> : vector<64x8xf32>
    %36 = tpu.matmul %33, %35, %cst_25 {dimension_numbers = #tpu.dot_dimension_numbers<[1], [0], [0], [1], [0, 0, 1, 1], [], []>} : vector<64x16xf32>, vector<16x8xf32>, vector<64x8xf32> -> vector<64x8xf32>
    %37 = arith.addf %28, %36 : vector<64x8xf32>
    %c0_26 = arith.constant 0 : index
    %c0_27 = arith.constant 0 : index
    %38 = vector.load %arg4[%c0_26, %c0_27] : memref<1x8xf32, #tpu.memory_space<vmem>>, vector<1x8xf32>
    %39 = vector.broadcast %38 : vector<1x8xf32> to vector<64x8xf32>
    %40 = arith.addf %37, %39 : vector<64x8xf32>
    %cst_28 = arith.constant 0.000000e+00 : f32
    %cst_29 = arith.constant 6.000000e+00 : f32
    %41 = vector.broadcast %cst_28 : f32 to vector<64x8xf32>
    %42 = arith.maximumf %41, %40 : vector<64x8xf32>
    %43 = vector.broadcast %cst_29 : f32 to vector<64x8xf32>
    %44 = arith.minimumf %43, %42 : vector<64x8xf32>
    %45 = vector.shape_cast %44 : vector<64x8xf32> to vector<8x8x8xf32>
    %c0_30 = arith.constant 0 : index
    %c0_31 = arith.constant 0 : index
    %c0_32 = arith.constant 0 : index
    %c0_33 = arith.constant 0 : index
    %46 = vector.load %arg5[%c0_30, %c0_31, %c0_32, %c0_33] : memref<1x8x8x8xf32, #tpu.memory_space<vmem>>, vector<1x8x8x8xf32>
    %47 = vector.shape_cast %46 : vector<1x8x8x8xf32> to vector<8x8x8xf32>
    %48 = vector.shape_cast %45 : vector<8x8x8xf32> to vector<1x8x8x8xf32>
    tpu.vector_store %arg5[%c0_30, %c0_31, %c0_32, %c0_33], %48 {strides = array<i32>} : memref<1x8x8x8xf32, #tpu.memory_space<vmem>>, vector<1x8x8x8xf32>,
    return
  }
  func.func @transform_0(%arg0: i32, %arg1: i32) -> (i32, i32, i32, i32) {
    %c0_i32 = arith.constant 0 : i32
    %c0_i32_0 = arith.constant 0 : i32
    %c0_i32_1 = arith.constant 0 : i32
    %c0_i32_2 = arith.constant 0 : i32
    return %arg0, %c0_i32, %c0_i32_0, %c0_i32_1 : i32, i32, i32, i32
  }
  func.func @transform_1(%arg0: i32, %arg1: i32) -> (i32, i32, i32) {
    %c0_i32 = arith.constant 0 : i32
    %c0_i32_0 = arith.constant 0 : i32
    %c0_i32_1 = arith.constant 0 : i32
    %c0_i32_2 = arith.constant 0 : i32
    return %c0_i32, %c0_i32_0, %c0_i32_1 : i32, i32, i32
  }
  func.func @transform_2(%arg0: i32, %arg1: i32) -> (i32, i32) {
    %c0_i32 = arith.constant 0 : i32
    %c0_i32_0 = arith.constant 0 : i32
    %c0_i32_1 = arith.constant 0 : i32
    return %c0_i32, %c0_i32_0 : i32, i32
  }
  func.func @transform_3(%arg0: i32, %arg1: i32) -> (i32, i32, i32, i32) {
    %c0_i32 = arith.constant 0 : i32
    %c0_i32_0 = arith.constant 0 : i32
    %c0_i32_1 = arith.constant 0 : i32
    return %arg0, %arg1, %c0_i32, %c0_i32_0 : i32, i32, i32, i32
  }
}

</mosaic_0001>

<bundles_post_ra>
// kernel: conv2d_3x3_forward.1
= control target key start
LH: loop header
LB: loop body
LE: loop exit
PB: predicated region body
PF: predicated region fallthrough
CT: control target
= control target key end

     0   :  { %s1142_s12 = smov 0   ;;  %s1144_s13 = smov 0   ;;  %s1286_s0 = inlined_call_operand.vmem [shape: f32[2,9,9,16], index: 0, kind: input, shape index: {}]   ;;  %s1287_s1 = inlined_call_operand.vmem [shape: f32[4,16,8], index: 1, kind: input, shape index: {}]   ;;  %s1288_s2 = inlined_call_operand.vmem [shape: f32[1,8], index: 2, kind: input, shape index: {}]   ;;  %s1289_s3 = inlined_call_operand.vmem [shape: f32[2,8,8,8], index: 3, kind: output, shape index: {}]  }
   0x1   :  { %s1146_s14 = smov 0  }
   0x2 LB: > { %s25_s15 = sadd.s32 1, %s1116_s13  ;;  %p907_p0 = scmp.ge.s32.totalorder %s1120_s14, 1  ;;  %s1120_s14 = sphi %s1146_s14, %s13_s14   ;;  %s1116_s13 = sphi %s1144_s13, %s1291_s13   ;;  %s1112_s12 = sphi %s1142_s12, %s1290_s12  }
   0x3   : > { %p27_p1 = scmp.ge.s32.totalorder %s25_s15, 2  ;;  %p151_p2 = scmp.lt.s32.totalorder %s1120_s14, 3 }
   0x5   : > { %s1293_s15 = smov (%p27_p1, %s25_s15), 0  ;;  %p152_p3 = pnand %p907_p0, %p151_p2 }
   0x6   : > { %p179_p4 = scmp.lt.s32.totalorder (!%p152_p3), %s1112_s12, 1 }
   0x7   : > { %155 = sbr.rel (%p152_p3) target bundleno = 253 (0xfd), region = 32 }
   0xc   : > { %v912_v0 = vld [vmem:[%s1287_s1 + $0x18] sm:$0xff]  ;;  %v206_v1 = vld [vmem:[%s1287_s1 + $0x8] sm:$0xff]  ;;  %v911_v2 = vld [vmem:[%s1287_s1 + $0x10] sm:$0xff]  ;;  %s1295_s12 = smov (!%p179_p4, %s1112_s12), 1  ;;  %vm218_vm0 = vcmask 130048   ;;  %vm807_vm1 = vcmask 64512  }
   0xd   : > { %1009 = vmatprep.subr.mxu0 %v912_v0  ;;  %1025 = vmatprep.subr.mxu1 %v206_v1  ;;  %v205_v3 = vld [vmem:[%s1287_s1] sm:$0xff]  ;;  %v938_v4 = vld [vmem:[%s1287_s1 + $0x28] sm:$0xff]  ;;  %v956_v5 = vld [vmem:[%s1287_s1 + $0x38] sm:$0xff]  ;;  %s1073_s28 = smul.u32 144, %s1295_s12  ;;  %s968_s11 = sshll.u32 %s1295_s12, 6 }
   0xe   : > { %1010 = vmatpush3.msra.mxu0 %v912_v0  ;;  %1026 = vmatpush3.msra.mxu1 %v206_v1  ;;  %v937_v12 = vld [vmem:[%s1287_s1 + $0x20] sm:$0xff]  ;;  %v955_v13 = vld [vmem:[%s1287_s1 + $0x30] sm:$0xff]  ;;  %s1253_s18 = scalar_lea.vmem %s1289_s3, %s968_s11 }
   0xf   : > { %1011 = vmatprep.subr.mxu0 %v911_v2  ;;  %1027 = vmatprep.subr.mxu1 %v205_v3  ;;  %s1184_s4 = scalar_lea.vmem %s1286_s0, %s1073_s28  ;;  %v1245_v47 = vld [vmem:[%s1288_s2] ss:$0 sm:$0xff] }
  0x10   : > { %1012 = vmatpush3.msra.mxu0 %v911_v2  ;;  %1028 = vmatpush3.msra.mxu1 %v205_v3  ;;  %v207_v6 = vld [vmem:[%s1184_s4 + $0x1] sm:$0xff]  ;;  %v208_v8 = vld [vmem:[%s1184_s4 + $0x11] sm:$0xff] }
  0x11   : > { %1041 = vmatprep.subr.mxu0 %v938_v4  ;;  %1057 = vmatprep.subr.mxu1 %v956_v5  ;;  %v197_v7 = vld [vmem:[%s1184_s4] sm:$0xff]  ;;  %v198_v9 = vld [vmem:[%s1184_s4 + $0x10] sm:$0xff] }
  0x12   : > { %1013 = vmatprep.mubr.msk.f32.mxu0 %vm218_vm0, %v207_v6  ;;  %1029 = vmatprep.mubr.msk.f32.mxu1 %vm218_vm0, %v197_v7  ;;  %v209_v10 = vld [vmem:[%s1184_s4 + $0x21] sm:$0xff]  ;;  %v210_v14 = vld [vmem:[%s1184_s4 + $0x31] sm:$0xff] }
  0x13   : > { %v199_v11 = vld [vmem:[%s1184_s4 + $0x20] sm:$0xff]  ;;  %1014 = vmatmul.mubr.msk.f32.vlgmr.msra.gmra.mxu0 %vm218_vm0, %v208_v8  ;;  %1030 = vmatmul.mubr.msk.f32.vlgmr.msra.gmra.mxu1 %vm218_vm0, %v198_v9  ;;  %v200_v15 = vld [vmem:[%s1184_s4 + $0x30] sm:$0xff] }
  0x14   : > { %1042 = vmatpush3.msra.mxu0 %v938_v4  ;;  %1058 = vmatpush3.msra.mxu1 %v956_v5  ;;  %v211_v16 = vld [vmem:[%s1184_s4 + $0x41] sm:$0xff]  ;;  %v212_v18 = vld [vmem:[%s1184_s4 + $0x51] sm:$0xff] }
  0x15   : > { %1016 = vmatprep.mubr.msk.f32.mxu0 %vm218_vm0, %v209_v10  ;;  %1032 = vmatprep.mubr.msk.f32.mxu1 %vm218_vm0, %v199_v11  ;;  %v201_v17 = vld [vmem:[%s1184_s4 + $0x40] sm:$0xff]  ;;  %v202_v19 = vld [vmem:[%s1184_s4 + $0x50] sm:$0xff] }
  0x16   : > { %1043 = vmatprep.subr.mxu0 %v937_v12  ;;  %1059 = vmatprep.subr.mxu1 %v955_v13  ;;  %v213_v20 = vld [vmem:[%s1184_s4 + $0x61] sm:$0xff]  ;;  %v214_v22 = vld [vmem:[%s1184_s4 + $0x71] sm:$0xff] }
  0x17   : > { %1017 = vmatmul.mubr.msk.f32.gmra.mxu0 %vm218_vm0, %v210_v14  ;;  %1033 = vmatmul.mubr.msk.f32.gmra.mxu1 %vm218_vm0, %v200_v15  ;;  %v203_v21 = vld [vmem:[%s1184_s4 + $0x60] sm:$0xff]  ;;  %v204_v23 = vld [vmem:[%s1184_s4 + $0x70] sm:$0xff] }
  0x18   : > { %1019 = vmatprep.mubr.msk.f32.mxu0 %vm218_vm0, %v211_v16  ;;  %1035 = vmatprep.mubr.msk.f32.mxu1 %vm218_vm0, %v201_v17  ;;  %v936_v24 = vld [vmem:[%s1184_s4 + $0x80] sm:$0xff] }
  0x19   : > { %1044 = vmatpush3.msra.mxu0 %v937_v12  ;;  %1060 = vmatpush3.msra.mxu1 %v955_v13  ;;  %v954_v25 = vld [vmem:[%s1184_s4 + $0x81] sm:$0xff] }
  0x1b   : > { %1020 = vmatmul.mubr.msk.f32.gmra.mxu0 %vm218_vm0, %v212_v18  ;;  %1036 = vmatmul.mubr.msk.f32.gmra.mxu1 %vm218_vm0, %v202_v19 }
  0x1c   : > { %1022 = vmatprep.mubr.msk.f32.mxu0 %vm218_vm0, %v213_v20  ;;  %1038 = vmatprep.mubr.msk.f32.mxu1 %vm218_vm0, %v203_v21 }
  0x1f   : > { %1023 = vmatmul.mubr.msk.f32.gmra.mxu0 %vm218_vm0, %v214_v22  ;;  %1039 = vmatmul.mubr.msk.f32.gmra.mxu1 %vm218_vm0, %v204_v23 }
  0x20   : > { %1045 = vmatprep.mubr.msk.f32.mxu0 %vm218_vm0, %v198_v9  ;;  %1061 = vmatprep.mubr.msk.f32.mxu1 %vm218_vm0, %v208_v8 }
  0x23   : > { %1046 = vmatmul.mubr.msk.f32.vlgmr.msra.gmra.mxu0 %vm218_vm0, %v199_v11  ;;  %1062 = vmatmul.mubr.msk.f32.vlgmr.msra.gmra.mxu1 %vm218_vm0, %v209_v10 }
  0x24   : > { %1048 = vmatprep.mubr.msk.f32.mxu0 %vm218_vm0, %v200_v15  ;;  %1064 = vmatprep.mubr.msk.f32.mxu1 %vm218_vm0, %v210_v14 }
  0x27   : > { %1049 = vmatmul.mubr.msk.f32.gmra.mxu0 %vm218_vm0, %v201_v17  ;;  %1065 = vmatmul.mubr.msk.f32.gmra.mxu1 %vm218_vm0, %v211_v16 }
  0x28   : > { %1051 = vmatprep.mubr.msk.f32.mxu0 %vm218_vm0, %v202_v19  ;;  %1067 = vmatprep.mubr.msk.f32.mxu1 %vm218_vm0, %v212_v18 }
  0x2b   : > { %1052 = vmatmul.mubr.msk.f32.gmra.mxu0 %vm218_vm0, %v203_v21  ;;  %1068 = vmatmul.mubr.msk.f32.gmra.mxu1 %vm218_vm0, %v213_v20 }
  0x2c   : > { %1054 = vmatprep.mubr.msk.f32.mxu0 %vm218_vm0, %v204_v23  ;;  %1070 = vmatprep.mubr.msk.f32.mxu1 %vm218_vm0, %v214_v22 }
  0x2f   : > { %1055 = vmatmul.mubr.msk.f32.gmra.mxu0 %vm218_vm0, %v936_v24  ;;  %1071 = vmatmul.mubr.msk.f32.gmra.mxu1 %vm218_vm0, %v954_v25 }
  0xd3   : > { %v1015_v26 = vpop.f32.mrf.mxu0  ;;  %v1031_v27 = vpop.f32.mrf.mxu1 }
  0xd4   : > { %v444_v42 = vadd.f32 %v1031_v27, %v1015_v26 }
  0xd5   : > { %v309_v28 = vpop.f32.mrf.mxu0  ;;  %v438_v29 = vpop.f32.mrf.mxu1 }
  0xd6   : > { %v439_v45 = vadd.f32 %v438_v29, %v309_v28 }
  0xd7   : > { %v1018_v30 = vpop.f32.mrf.mxu0  ;;  %v1034_v31 = vpop.f32.mrf.mxu1 }
  0xd8   : > { %v454_v50 = vadd.f32 %v1034_v31, %v1018_v30 }
  0xd9   : > { %v319_v32 = vpop.f32.mrf.mxu0  ;;  %v448_v33 = vpop.f32.mrf.mxu1 }
  0xda   : > { %v449_v55 = vadd.f32 %v448_v33, %v319_v32 }
  0xdb   : > { %v1021_v34 = vpop.f32.mrf.mxu0  ;;  %v1037_v35 = vpop.f32.mrf.mxu1 }
  0xdc   : > { %v464_v1 = vadd.f32 %v1037_v35, %v1021_v34 }
  0xdd   : > { %v329_v36 = vpop.f32.mrf.mxu0  ;;  %v458_v37 = vpop.f32.mrf.mxu1 }
  0xde   : > { %v459_v2 = vadd.f32 %v458_v37, %v329_v36 }
  0xdf   : > { %v1024_v38 = vpop.f32.mrf.mxu0  ;;  %v1040_v39 = vpop.f32.mrf.mxu1 }
  0xe0   : > { %v474_v9 = vadd.f32 %v1040_v39, %v1024_v38 }
  0xe1   : > { %v339_v40 = vpop.f32.mrf.mxu0  ;;  %v468_v41 = vpop.f32.mrf.mxu1 }
  0xe2   : > { %v469_v17 = vadd.f32 %v468_v41, %v339_v40 }
  0xe3   : > { %v1047_v43 = vpop.f32.mrf.mxu0  ;;  %v1063_v44 = vpop.f32.mrf.mxu1 }
  0xe4   : > { %v621_v46 = vadd.f32 %v1047_v43, %v444_v42 }
  0xe5   : > { %v581_v48 = vpop.f32.mrf.mxu0  ;;  %v729_v49 = vpop.f32.mrf.mxu1 }
  0xe6   : > { %v769_v51 = vadd.f32 %v1063_v44, %v621_v46  ;;  %v620_v52 = vadd.f32 %v581_v48, %v439_v45 }
  0xe7   : > { %v1050_v53 = vpop.f32.mrf.mxu0  ;;  %v1066_v54 = vpop.f32.mrf.mxu1 }
  0xe8   : > { %v784_v56 = vadd.f32 %v1245_v47, %v769_v51  ;;  %v768_v57 = vadd.f32 %v729_v49, %v620_v52  ;;  %v623_v58 = vadd.f32 %v1050_v53, %v454_v50 }
  0xe9   : > { %v591_v59 = vpop.f32.mrf.mxu0  ;;  %v739_v60 = vpop.f32.mrf.mxu1 }
  0xea   : > { %v792_v61 = vmax.f32 %v784_v56, 0.0  ;;  %v783_v62 = vadd.f32 %v1245_v47, %v768_v57  ;;  %v771_v63 = vadd.f32 %v1066_v54, %v623_v58  ;;  %v622_v0 = vadd.f32 %v591_v59, %v449_v55 }
  0xeb   : > { %v1053_v3 = vpop.f32.mrf.mxu0  ;;  %v1069_v4 = vpop.f32.mrf.mxu1 }
  0xec   : > { %v800_v5 = vmin.f32 %v792_v61, 6.0  ;;  %v791_v6 = vmax.f32 %v783_v62, 0.0  ;;  %v786_v7 = vadd.f32 %v1245_v47, %v771_v63  ;;  %v770_v8 = vadd.f32 %v739_v60, %v622_v0 }
  0xed   : > { %v625_v10 = vadd.f32 %v1053_v3, %v464_v1  ;;  %v601_v11 = vpop.f32.mrf.mxu0  ;;  %v749_v12 = vpop.f32.mrf.mxu1 }
  0xee   : > { %809 = vst.msk [vmem:[%s1253_s18 + $0x8] sm:$0xff] %vm807_vm1, %v800_v5  ;;  %v799_v13 = vmin.f32 %v791_v6, 6.0  ;;  %v794_v14 = vmax.f32 %v786_v7, 0.0  ;;  %v785_v15 = vadd.f32 %v1245_v47, %v770_v8  ;;  %v624_v16 = vadd.f32 %v601_v11, %v459_v2 }
  0xef   : > { %v773_v18 = vadd.f32 %v1069_v4, %v625_v10  ;;  %v1056_v19 = vpop.f32.mrf.mxu0  ;;  %v1072_v20 = vpop.f32.mrf.mxu1 }
  0xf0   : > { %808 = vst.msk [vmem:[%s1253_s18] sm:$0xff] %vm807_vm1, %v799_v13  ;;  %v802_v21 = vmin.f32 %v794_v14, 6.0  ;;  %v793_v22 = vmax.f32 %v785_v15, 0.0  ;;  %v772_v23 = vadd.f32 %v749_v12, %v624_v16  ;;  %v627_v24 = vadd.f32 %v1056_v19, %v474_v9 }
  0xf1   : > { %v788_v25 = vadd.f32 %v1245_v47, %v773_v18  ;;  %v611_v26 = vpop.f32.mrf.mxu0  ;;  %v759_v32 = vpop.f32.mrf.mxu1 }
  0xf2   : > { %811 = vst.msk [vmem:[%s1253_s18 + $0x18] sm:$0xff] %vm807_vm1, %v802_v21  ;;  %v801_v27 = vmin.f32 %v793_v22, 6.0  ;;  %v787_v28 = vadd.f32 %v1245_v47, %v772_v23  ;;  %v775_v29 = vadd.f32 %v1072_v20, %v627_v24  ;;  %v626_v30 = vadd.f32 %v611_v26, %v469_v17 }
  0xf3   : > { %v796_v31 = vmax.f32 %v788_v25, 0.0 }
  0xf4   : > { %810 = vst.msk [vmem:[%s1253_s18 + $0x10] sm:$0xff] %vm807_vm1, %v801_v27  ;;  %v795_v33 = vmax.f32 %v787_v28, 0.0  ;;  %v790_v34 = vadd.f32 %v1245_v47, %v775_v29  ;;  %v774_v35 = vadd.f32 %v759_v32, %v626_v30 }
  0xf5   : > { %v804_v36 = vmin.f32 %v796_v31, 6.0 }
  0xf6   : > { %v803_v37 = vmin.f32 %v795_v33, 6.0  ;;  %v798_v38 = vmax.f32 %v790_v34, 0.0  ;;  %v789_v39 = vadd.f32 %v1245_v47, %v774_v35 }
  0xf7   : > { %813 = vst.msk [vmem:[%s1253_s18 + $0x28] sm:$0xff] %vm807_vm1, %v804_v36 }
  0xf8   : > { %812 = vst.msk [vmem:[%s1253_s18 + $0x20] sm:$0xff] %vm807_vm1, %v803_v37  ;;  %v806_v40 = vmin.f32 %v798_v38, 6.0  ;;  %v797_v41 = vmax.f32 %v789_v39, 0.0 }
  0xfa   : > { %815 = vst.msk [vmem:[%s1253_s18 + $0x38] sm:$0xff] %vm807_vm1, %v806_v40  ;;  %v805_v42 = vmin.f32 %v797_v41, 6.0 }
  0xfc   : > { %814 = vst.msk [vmem:[%s1253_s18 + $0x30] sm:$0xff] %vm807_vm1, %v805_v42 }
  0xfd PF: > { %s13_s14 = sadd.s32 1, %s1120_s14   ;;  %s1290_s12 = smov %s1116_s13 }
  0xfe   : > { %p10_p5 = scmp.ge.s32.totalorder %s13_s14, 4   ;;  %s1291_s13 = smov %s1293_s15 }
 0x100   :  { %12 = sbr.rel (!%p10_p5) target bundleno = 2 (0x2), region = 67 }

</bundles_post_ra>
